<compile_context>
chip_gen: v6e
topology: v6e:2x2x1
jax: 0.10.0
libtpu: 0.0.40
codegen_flags: <defaults>
</compile_context>

<pallas_src>
import functools

import jax
import jax.numpy as jnp
from jax.experimental import pallas as pl
from jax.experimental.pallas import tpu as pltpu

BN_EPS = 1e-5
LANE = 128
BF16_SUBLANE = 16  # bf16 packs 16 rows per (8,128) f32-equivalent vreg tile


def _round_up(x, m):
    return (x + m - 1) // m * m


def _device_caps():
    """(tile_m cap, scoped-VMEM cap) for the current TPU generation."""
    phys_vmem = 64 * 1024 * 1024
    try:
        phys_vmem = int(getattr(pltpu.get_tpu_info(), "vmem_capacity_bytes",
                                phys_vmem))
    except Exception:
        pass
    if phys_vmem >= 96 * 1024 * 1024:      # v5e / v6e: 128 MiB VMEM per core
        return 1024, 64 * 1024 * 1024
    return 512, 40 * 1024 * 1024           # v7x (64 MiB per TC) / unknown


def _pad_lane_dim(d):
    """Lane-padding policy.

    Small dims keep their true size (full-dim blocks are legal): padding
    Cout=8 -> 128 would inflate HBM traffic on y/out by 16x for a ~4x
    store-efficiency win.  Dims >= 256 prefer 256 alignment (v6e/v7x MXU is
    2x256x256) when the extra padding is cheap; otherwise 128.
    """
    if d < 64:
        return d
    if d >= 256 and (_round_up(d, 256) - d) <= d // 8:
        return _round_up(d, 256)
    return _round_up(d, 128)


def _pick_tile_k(kp):
    """Split the contraction dim when it is too large to keep resident."""
    if kp <= 2048:
        return kp, kp, 1
    grid_k = -(-kp // 2048)
    tile_k = _round_up(-(-kp // grid_k), LANE)
    return tile_k * grid_k, tile_k, grid_k


def _pick_tile_m(m, tile_k, cp, tile_cap, vmem_cap):
    budget = int(vmem_cap * 0.6)
    fixed = 2 * tile_k * cp * 2 + 8 * cp * 4          # dbl-buf weights + rows
    per_row = 2 * tile_k * 2 + 2 * cp * 2 + cp * 4    # patch, y (bf16, x2), acc
    t = (budget - fixed) // max(per_row, 1)
    t = max(BF16_SUBLANE, min(int(t), tile_cap))
    t = (t // BF16_SUBLANE) * BF16_SUBLANE
    return min(t, _round_up(m, BF16_SUBLANE))


def _vmem_limit(tile_m, tile_k, cp, vmem_cap):
    need = (2 * tile_m * tile_k * 2   # patch tile, double-buffered bf16
            + 2 * tile_k * cp * 2     # weight tile, double-buffered bf16
            + 2 * tile_m * cp * 2     # y tile, double-buffered bf16
            + tile_m * cp * 4         # f32 accumulator scratch
            + 16 * cp * 4)            # bias / stats rows
    return int(min(max(2 * need, 8 * 1024 * 1024), vmem_cap))


# ---------------------------------------------------------------------------
# Phase 1: conv-as-matmul (+K reduction) + bias + ReLU, write bf16 y,
#          emit per-tile partial channel stats (sum, sumsq).
# ---------------------------------------------------------------------------
def _conv_relu_stats_kernel(patch_ref, w_ref, b_ref, y_ref, stats_ref, acc_ref,
                            *, tile_m, m_valid):
    i = pl.program_id(0)
    k = pl.program_id(1)
    nk = pl.num_programs(1)

    @pl.when(k == 0)
    def _():
        acc_ref[...] = jnp.zeros_like(acc_ref)

    # bf16 x bf16 -> f32 MXU accumulate over the K grid axis.
    acc_ref[...] += jnp.dot(patch_ref[...], w_ref[...],
                            preferred_element_type=jnp.float32)

    @pl.when(k == nk - 1)
    def _():
        y = jnp.maximum(acc_ref[...] + b_ref[...], 0.0)     # f32 in-register
        y_ref[...] = y.astype(y_ref.dtype)                  # bf16 to HBM

        # Validity mask for zero-padded rows (row >= m_valid) so the batch
        # statistics stay unbiased; reduction done on the MXU as
        # (1, TILE_M) @ (TILE_M, C) with the f32 y.
        row = jax.lax.broadcasted_iota(jnp.int32, (1, tile_m), 1) + i * tile_m
        mask = (row < m_valid).astype(jnp.float32)
        s = jnp.dot(mask, y, preferred_element_type=jnp.float32)        # (1, C)
        q = jnp.dot(mask, y * y, preferred_element_type=jnp.float32)    # (1, C)
        stats_ref[...] = jnp.concatenate([s, q], axis=0)[None, :, :]    # (1,2,C)


# ---------------------------------------------------------------------------
# Phase 2: apply batch-norm affine (y * scale + shift), bf16 in -> f32 out.
# ---------------------------------------------------------------------------
def _bn_apply_kernel(y_ref, scale_ref, shift_ref, o_ref):
    y = y_ref[...].astype(jnp.float32)
    o_ref[...] = (y * scale_ref[...] + shift_ref[...]).astype(o_ref.dtype)


def _im2col_nhwc(x_nhwc, k, stride, pad):
    """Extract kxk patches (glue: strided slices + concat). Returns (M, k*k*Cin)."""
    n, h, w, c = x_nhwc.shape
    xp = jnp.pad(x_nhwc, ((0, 0), (pad, pad), (pad, pad), (0, 0)))
    ho = (h + 2 * pad - k) // stride + 1
    wo = (w + 2 * pad - k) // stride + 1
    patches = []
    for kh in range(k):
        for kw in range(k):
            patches.append(
                xp[:, kh: kh + stride * ho: stride, kw: kw + stride * wo: stride, :]
            )
    p = jnp.concatenate(patches, axis=-1)  # (N, Ho, Wo, k*k*Cin), ordered (kh, kw, c)
    return p.reshape(n * ho * wo, k * k * c), ho, wo


def _pad_vec(vec, n):
    v = vec.astype(jnp.float32).reshape(-1)
    if v.shape[0] == n:
        return v
    return jnp.zeros((n,), jnp.float32).at[: v.shape[0]].set(v)


def conv_layer_forward(x_nchw, conv_w, conv_b, bn_gamma, bn_beta,
                       kernel_size=3, stride=2, padding=1):
    """Pallas implementation of ConvLayer.forward.

    x_nchw:  (N, Cin, H, W)   conv_w: (Cout, Cin, K, K)   conv_b: (Cout,)
    bn_gamma / bn_beta: (Cout,)
    Returns (N, Cout, Ho, Wo), matching the PyTorch module (NCHW).
    """
    cout, cin, k, _ = conv_w.shape
    if cin == cout:  # mirrors ConvLayer.__init__
        stride = 1

    n = x_nchw.shape[0]
    x_nhwc = jnp.transpose(x_nchw, (0, 2, 3, 1)).astype(jnp.float32)
    patches, ho, wo = _im2col_nhwc(x_nhwc, k, stride, padding)  # (M, K*K*Cin)
    m, kdim = patches.shape

    tile_cap, vmem_cap = _device_caps()
    kp0 = _pad_lane_dim(kdim)
    kp, tile_k, grid_k = _pick_tile_k(kp0)
    cp = _pad_lane_dim(cout)
    tile_m = _pick_tile_m(m, tile_k, cp, tile_cap, vmem_cap)
    mp = _round_up(m, tile_m)
    grid_m = mp // tile_m
    vmem_bytes = _vmem_limit(tile_m, tile_k, cp, vmem_cap)

    # ---- Padded / bf16 operands for the MXU path -----------------------------
    patches_bf = patches.astype(jnp.bfloat16)
    if mp != m or kp != kdim:
        patches_p = jnp.zeros((mp, kp), jnp.bfloat16).at[:m, :kdim].set(patches_bf)
    else:
        patches_p = patches_bf

    # torch weight (Cout, Cin, kh, kw) -> (kh, kw, Cin, Cout) -> (K*K*Cin, Cout)
    w_mat = jnp.transpose(conv_w, (2, 3, 1, 0)).reshape(kdim, cout)
    w_bf = w_mat.astype(jnp.bfloat16)
    if kp != kdim or cp != cout:
        w_p = jnp.zeros((kp, cp), jnp.bfloat16).at[:kdim, :cout].set(w_bf)
    else:
        w_p = w_bf

    b_p = _pad_vec(conv_b, cp).reshape(1, cp)
    g_p = _pad_vec(bn_gamma, cp)
    be_p = _pad_vec(bn_beta, cp)

    # ---- Phase 1: tiled conv + ReLU, per-tile partial channel stats ----------
    kern1 = functools.partial(_conv_relu_stats_kernel, tile_m=tile_m, m_valid=m)
    y_flat, stats = pl.pallas_call(
        kern1,
        out_shape=(
            jax.ShapeDtypeStruct((mp, cp), jnp.bfloat16),        # bf16 intermediate
            jax.ShapeDtypeStruct((grid_m, 2, cp), jnp.float32),  # per-tile sum/sumsq
        ),
        grid=(grid_m, grid_k),
        in_specs=[
            pl.BlockSpec((tile_m, tile_k), lambda i, kk: (i, kk)),  # patch tile
            pl.BlockSpec((tile_k, cp), lambda i, kk: (kk, 0)),      # weight tile
            pl.BlockSpec((1, cp), lambda i, kk: (0, 0)),            # bias row
        ],
        out_specs=(
            pl.BlockSpec((tile_m, cp), lambda i, kk: (i, 0)),       # y tile
            pl.BlockSpec((1, 2, cp), lambda i, kk: (i, 0, 0)),      # partial stats
        ),
        scratch_shapes=[pltpu.VMEM((tile_m, cp), jnp.float32)],     # f32 acc
        compiler_params=pltpu.CompilerParams(
            dimension_semantics=("parallel", "arbitrary"),  # M megacore-shardable
            vmem_limit_bytes=vmem_bytes,
        ),
        cost_estimate=pl.CostEstimate(
            flops=2 * mp * kp * cp + 6 * mp * cp,
            transcendentals=0,
            bytes_accessed=mp * kp * 2 + kp * cp * 2 + mp * cp * 2
            + grid_m * 2 * cp * 4,
        ),
    )(patches_p, w_p, b_p)

    # ---- Tiny per-channel BN math in JAX glue (combine tile partials) --------
    # TODO(synk): per-tile centered (Welford-style) partials would avoid the
    # E[y^2]-E[y]^2 cancellation for very large M; single-pass f32 is kept here.
    ch_sum = jnp.sum(stats[:, 0, :], axis=0)
    ch_sq = jnp.sum(stats[:, 1, :], axis=0)
    mean = ch_sum / m
    var = jnp.maximum(ch_sq / m - mean * mean, 0.0)
    inv = jax.lax.rsqrt(var + BN_EPS)
    scale = (g_p * inv).reshape(1, cp)
    shift = (be_p - g_p * mean * inv).reshape(1, cp)

    # ---- Phase 2: apply affine normalization, tiled + parallel ---------------
    out_flat = pl.pallas_call(
        _bn_apply_kernel,
        out_shape=jax.ShapeDtypeStruct((mp, cp), jnp.float32),
        grid=(grid_m,),
        in_specs=[
            pl.BlockSpec((tile_m, cp), lambda i: (i, 0)),
            pl.BlockSpec((1, cp), lambda i: (0, 0)),
            pl.BlockSpec((1, cp), lambda i: (0, 0)),
        ],
        out_specs=pl.BlockSpec((tile_m, cp), lambda i: (i, 0)),
        compiler_params=pltpu.CompilerParams(
            dimension_semantics=("parallel",),
            vmem_limit_bytes=vmem_bytes,
        ),
        cost_estimate=pl.CostEstimate(
            flops=2 * mp * cp,
            transcendentals=0,
            bytes_accessed=mp * cp * 2 + mp * cp * 4,
        ),
    )(y_flat, scale, shift)

    out_nhwc = out_flat[:m, :cout].reshape(n, ho, wo, cout)
    return jnp.transpose(out_nhwc, (0, 3, 1, 2))  # back to NCHW


def _reference(x_nchw, conv_w, conv_b, bn_gamma, bn_beta, stride=2, padding=1):
    """Pure-JAX f32 reference (conv -> relu -> training-mode batchnorm)."""
    cout, cin, k, _ = conv_w.shape
    if cin == cout:
        stride = 1
    x_nhwc = jnp.transpose(x_nchw, (0, 2, 3, 1)).astype(jnp.float32)
    w_hwio = jnp.transpose(conv_w, (2, 3, 1, 0)).astype(jnp.float32)
    y = jax.lax.conv_general_dilated(
        x_nhwc, w_hwio, window_strides=(stride, stride),
        padding=((padding, padding), (padding, padding)),
        dimension_numbers=("NHWC", "HWIO", "NHWC"),
    ) + conv_b
    y = jnp.maximum(y, 0.0)
    mean = jnp.mean(y, axis=(0, 1, 2))
    var = jnp.mean((y - mean) ** 2, axis=(0, 1, 2))
    y = bn_gamma * (y - mean) / jnp.sqrt(var + BN_EPS) + bn_beta
    return jnp.transpose(y, (0, 3, 1, 2))


if __name__ == "__main__":
    key = jax.random.PRNGKey(0)
    k_x, k_w, k_b = jax.random.split(key, 3)

    N, Cin, H, W = 2, 4, 16, 16
    Cout, K = 8, 3  # Cin != Cout -> stride stays 2

    x = jax.random.normal(k_x, (N, Cin, H, W), dtype=jnp.float32)
    conv_w = jax.random.normal(k_w, (Cout, Cin, K, K), dtype=jnp.float32) * 0.1
    conv_b = jax.random.normal(k_b, (Cout,), dtype=jnp.float32) * 0.1
    bn_gamma = jnp.ones((Cout,), dtype=jnp.float32)   # BatchNorm2d default init
    bn_beta = jnp.zeros((Cout,), dtype=jnp.float32)

    out = conv_layer_forward(x, conv_w, conv_b, bn_gamma, bn_beta)
    out = jax.block_until_ready(out)

    ref = _reference(x, conv_w, conv_b, bn_gamma, bn_beta)
    assert out.shape == (N, Cout, H // 2, W // 2), out.shape
    # Tolerance accounts for bf16 matmul operands and the bf16 intermediate y
    # (f32 MXU accumulation, f32 batch statistics).
    assert jnp.allclose(out, ref, rtol=5e-2, atol=5e-2), float(
        jnp.max(jnp.abs(out - ref))
    )
    print("KERNEL_OK")
</pallas_src>

<mosaic_0001>
module attributes {stable_mosaic.version = 11 : i64} {
  func.func @_conv_relu_stats_kernel(%arg0: i32, %arg1: i32, %arg2: memref<128x36xbf16, #tpu.memory_space<vmem>>, %arg3: memref<36x8xbf16, #tpu.memory_space<vmem>>, %arg4: memref<1x8xf32, #tpu.memory_space<vmem>>, %arg5: memref<128x8xbf16, #tpu.memory_space<vmem>>, %arg6: memref<1x2x8xf32, #tpu.memory_space<vmem>>, %arg7: memref<128x8xf32, #tpu.memory_space<vmem>>) attributes {dimension_semantics = [#tpu.dimension_semantics<parallel>, #tpu.dimension_semantics<arbitrary>], iteration_bounds = array<i64: 1, 1>, scalar_prefetch = 0 : i64, scratch_operands = 1 : i64, tpu.core_type = #tpu.core_type<tc>, window_params = [{transform_indices = @transform_0, window_bounds = array<i64: 128, 36>}, {transform_indices = @transform_1, window_bounds = array<i64: 36, 8>}, {pipeline_mode = #tpu.pipeline_mode<synchronous>, transform_indices = @transform_2, window_bounds = array<i64: 1, 8>}, {transform_indices = @transform_3, window_bounds = array<i64: 128, 8>}, {transform_indices = @transform_4, window_bounds = array<i64: 1, 2, 8>}]} {
    %c0_i32 = arith.constant 0 : i32
    %0 = arith.cmpi eq, %arg1, %c0_i32 : i32
    %1 = arith.extui %0 : i1 to i32
    %c0_i32_0 = arith.constant 0 : i32
    %2 = arith.cmpi ne, %1, %c0_i32_0 : i32
    scf.if %2 {
      %cst_10 = arith.constant 0.000000e+00 : f32
      %12 = vector.broadcast %cst_10 : f32 to vector<128x8xf32>
      %c0_11 = arith.constant 0 : index
      %c0_12 = arith.constant 0 : index
      %13 = vector.load %arg7[%c0_11, %c0_12] : memref<128x8xf32, #tpu.memory_space<vmem>>, vector<128x8xf32>
      tpu.vector_store %arg7[%c0_11, %c0_12], %12 {strides = array<i32>} : memref<128x8xf32, #tpu.memory_space<vmem>>, vector<128x8xf32>,
    } else {
    }
    %c0 = arith.constant 0 : index
    %c0_1 = arith.constant 0 : index
    %3 = vector.load %arg7[%c0, %c0_1] : memref<128x8xf32, #tpu.memory_space<vmem>>, vector<128x8xf32>
    %c0_2 = arith.constant 0 : index
    %c0_3 = arith.constant 0 : index
    %4 = vector.load %arg2[%c0_2, %c0_3] : memref<128x36xbf16, #tpu.memory_space<vmem>>, vector<128x36xbf16>
    %c0_4 = arith.constant 0 : index
    %c0_5 = arith.constant 0 : index
    %5 = vector.load %arg3[%c0_4, %c0_5] : memref<36x8xbf16, #tpu.memory_space<vmem>>, vector<36x8xbf16>
    %cst = arith.constant dense<0.000000e+00> : vector<128x8xf32>
    %6 = tpu.matmul %4, %5, %cst {dimension_numbers = #tpu.dot_dimension_numbers<[1], [0], [0], [1], [0, 0, 1, 1], [], []>} : vector<128x36xbf16>, vector<36x8xbf16>, vector<128x8xf32> -> vector<128x8xf32>
    %7 = arith.addf %3, %6 : vector<128x8xf32>
    %c0_6 = arith.constant 0 : index
    %c0_7 = arith.constant 0 : index
    %8 = vector.load %arg7[%c0_6, %c0_7] : memref<128x8xf32, #tpu.memory_space<vmem>>, vector<128x8xf32>
    tpu.vector_store %arg7[%c0_6, %c0_7], %7 {strides = array<i32>} : memref<128x8xf32, #tpu.memory_space<vmem>>, vector<128x8xf32>,
    %c0_i32_8 = arith.constant 0 : i32
    %9 = arith.cmpi eq, %arg1, %c0_i32_8 : i32
    %10 = arith.extui %9 : i1 to i32
    %c0_i32_9 = arith.constant 0 : i32
    %11 = arith.cmpi ne, %10, %c0_i32_9 : i32
    scf.if %11 {
      %c0_10 = arith.constant 0 : index
      %c0_11 = arith.constant 0 : index
      %12 = vector.load %arg7[%c0_10, %c0_11] : memref<128x8xf32, #tpu.memory_space<vmem>>, vector<128x8xf32>
      %c0_12 = arith.constant 0 : index
      %c0_13 = arith.constant 0 : index
      %13 = vector.load %arg4[%c0_12, %c0_13] : memref<1x8xf32, #tpu.memory_space<vmem>>, vector<1x8xf32>
      %14 = vector.broadcast %13 : vector<1x8xf32> to vector<128x8xf32>
      %15 = arith.addf %12, %14 : vector<128x8xf32>
      %cst_14 = arith.constant 0.000000e+00 : f32
      %16 = vector.broadcast %cst_14 : f32 to vector<128x8xf32>
      %17 = arith.maximumf %15, %16 : vector<128x8xf32>
      %18 = arith.truncf %17 : vector<128x8xf32> to vector<128x8xbf16>
      %c0_15 = arith.constant 0 : index
      %c0_16 = arith.constant 0 : index
      %19 = vector.load %arg5[%c0_15, %c0_16] : memref<128x8xbf16, #tpu.memory_space<vmem>>, vector<128x8xbf16>
      tpu.vector_store %arg5[%c0_15, %c0_16], %18 {strides = array<i32>} : memref<128x8xbf16, #tpu.memory_space<vmem>>, vector<128x8xbf16>,
      %20 = tpu.iota {dimensions = array<i32: 1>} : vector<1x128xi32>
      %c128_i32 = arith.constant 128 : i32
      %21 = arith.muli %arg0, %c128_i32 : i32
      %22 = vector.broadcast %21 : i32 to vector<1x128xi32>
      %23 = arith.addi %20, %22 : vector<1x128xi32>
      %c128_i32_17 = arith.constant 128 : i32
      %24 = vector.broadcast %c128_i32_17 : i32 to vector<1x128xi32>
      %25 = arith.cmpi slt, %23, %24 : vector<1x128xi32>
      %26 = arith.extui %25 : vector<1x128xi1> to vector<1x128xi32>
      %27 = arith.sitofp %26 : vector<1x128xi32> to vector<1x128xf32>
      %cst_18 = arith.constant dense<0.000000e+00> : vector<1x8xf32>
      %28 = tpu.matmul %27, %17, %cst_18 {dimension_numbers = #tpu.dot_dimension_numbers<[1], [0], [0], [1], [0, 0, 1, 1], [], []>} : vector<1x128xf32>, vector<128x8xf32>, vector<1x8xf32> -> vector<1x8xf32>
      %29 = arith.mulf %17, %17 : vector<128x8xf32>
      %cst_19 = arith.constant dense<0.000000e+00> : vector<1x8xf32>
      %30 = tpu.matmul %27, %29, %cst_19 {dimension_numbers = #tpu.dot_dimension_numbers<[1], [0], [0], [1], [0, 0, 1, 1], [], []>} : vector<1x128xf32>, vector<128x8xf32>, vector<1x8xf32> -> vector<1x8xf32>
      %31 = tpu.concatenate %28, %30 in 0 : vector<1x8xf32>, vector<1x8xf32> -> vector<2x8xf32>
      %32 = vector.shape_cast %31 : vector<2x8xf32> to vector<1x2x8xf32>
      %c0_20 = arith.constant 0 : index
      %c0_21 = arith.constant 0 : index
      %c0_22 = arith.constant 0 : index
      %33 = vector.load %arg6[%c0_20, %c0_21, %c0_22] : memref<1x2x8xf32, #tpu.memory_space<vmem>>, vector<1x2x8xf32>
      tpu.vector_store %arg6[%c0_20, %c0_21, %c0_22], %32 {strides = array<i32>} : memref<1x2x8xf32, #tpu.memory_space<vmem>>, vector<1x2x8xf32>,
    } else {
    }
    return
  }
  func.func @transform_0(%arg0: i32, %arg1: i32) -> (i32, i32) {
    %c0_i32 = arith.constant 0 : i32
    return %arg0, %arg1 : i32, i32
  }
  func.func @transform_1(%arg0: i32, %arg1: i32) -> (i32, i32) {
    %c0_i32 = arith.constant 0 : i32
    %c0_i32_0 = arith.constant 0 : i32
    return %arg1, %c0_i32 : i32, i32
  }
  func.func @transform_2(%arg0: i32, %arg1: i32) -> (i32, i32) {
    %c0_i32 = arith.constant 0 : i32
    %c0_i32_0 = arith.constant 0 : i32
    %c0_i32_1 = arith.constant 0 : i32
    return %c0_i32, %c0_i32_0 : i32, i32
  }
  func.func @transform_3(%arg0: i32, %arg1: i32) -> (i32, i32) {
    %c0_i32 = arith.constant 0 : i32
    %c0_i32_0 = arith.constant 0 : i32
    return %arg0, %c0_i32 : i32, i32
  }
  func.func @transform_4(%arg0: i32, %arg1: i32) -> (i32, i32, i32) {
    %c0_i32 = arith.constant 0 : i32
    %c0_i32_0 = arith.constant 0 : i32
    %c0_i32_1 = arith.constant 0 : i32
    return %arg0, %c0_i32, %c0_i32_0 : i32, i32, i32
  }
}

</mosaic_0001>

<bundles_post_ra>
// kernel: tpu_custom_call.1
= control target key start
LH: loop header
LB: loop body
LE: loop exit
PB: predicated region body
PF: predicated region fallthrough
CT: control target
= control target key end

     0   :  { %vm156_vm0 = vcmask 1041408   ;;  %vm131_vm1 = vcmask 293888   ;;  %vm22_vm2 = vcmask 64512   ;;  %v845_v5 = vmov 0.0   ;;  %s1155_s0 = inlined_call_operand.vmem [shape: bf16[128,36], index: 0, kind: input, shape index: {}]   ;;  %s1156_s1 = inlined_call_operand.vmem [shape: bf16[36,8], index: 1, kind: input, shape index: {}]   ;;  %s1157_s2 = inlined_call_operand.vmem [shape: f32[1,8], index: 2, kind: input, shape index: {}]   ;;  %s1158_s3 = inlined_call_operand.vmem [shape: bf16[128,8], index: 3, kind: output, shape index: {0}]   ;;  %s1159_s4 = inlined_call_operand.hbm [shape: f32[1,2,8], index: 4, kind: output, shape index: {1}]  }
   0x1   :  { %v812_v0 = vld [vmem:[%s1156_s1 + $0x10] ss:$0 sps:$4 sm:$0x33]   ;;  %v813_v1 = vld [vmem:[%s1156_s1 + $0x8] sm:$0xff]   ;;  %v815_v3 = vld [vmem:[%s1155_s0] sm:$0xff]   ;;  %25 = vst.msk [vmem:[#allocation2 + $0x10] sm:$0xff] %vm22_vm2, %v845_v5  ;;  %737 = vmatprep.subr.mxu1 %v845_v5 }
   0x2   :  { %807 = vmatprep.subr.msk.bf16.mxu0 %vm156_vm0, %v812_v0  ;;  %v158_v2 = vsel %vm156_vm0, %v812_v0, 0  ;;  %v814_v4 = vld [vmem:[%s1156_s1] sm:$0xff]   ;;  %721 = vmatprep.mubr.msk.bf16.mxu0 %vm131_vm1, %v815_v3  ;;  %23 = vst.msk [vmem:[#allocation2] sm:$0xff] %vm22_vm2, %v845_v5  ;;  %24 = vst.msk [vmem:[#allocation2 + $0x8] sm:$0xff] %vm22_vm2, %v845_v5  ;;  %v816_v6 = vld [vmem:[%s1155_s0 + $0x8] sm:$0xff]  }
   0x3   :  { %716 = vmatpush3.bf16.msra.mxu0 %v158_v2  ;;  %26 = vst.msk [vmem:[#allocation2 + $0x18] sm:$0xff] %vm22_vm2, %v845_v5  ;;  %27 = vst.msk [vmem:[#allocation2 + $0x20] sm:$0xff] %vm22_vm2, %v845_v5  ;;  %v817_v7 = vld [vmem:[%s1155_s0 + $0x10] sm:$0xff]  }
   0x4   :  { %717 = vmatprep.subr.bf16.mxu0 %v813_v1  ;;  %28 = vst.msk [vmem:[#allocation2 + $0x28] sm:$0xff] %vm22_vm2, %v845_v5  ;;  %29 = vst.msk [vmem:[#allocation2 + $0x30] sm:$0xff] %vm22_vm2, %v845_v5 }
   0x5   :  { %30 = vst.msk [vmem:[#allocation2 + $0x38] sm:$0xff] %vm22_vm2, %v845_v5  ;;  %31 = vst.msk [vmem:[#allocation2 + $0x40] sm:$0xff] %vm22_vm2, %v845_v5 }
   0x6   :  { %32 = vst.msk [vmem:[#allocation2 + $0x48] sm:$0xff] %vm22_vm2, %v845_v5  ;;  %33 = vst.msk [vmem:[#allocation2 + $0x50] sm:$0xff] %vm22_vm2, %v845_v5 }
   0x7   :  { %34 = vst.msk [vmem:[#allocation2 + $0x58] sm:$0xff] %vm22_vm2, %v845_v5  ;;  %35 = vst.msk [vmem:[#allocation2 + $0x60] sm:$0xff] %vm22_vm2, %v845_v5  ;;  %718 = vmatpush3.bf16.msra.mxu0 %v813_v1 }
   0x8   :  { %36 = vst.msk [vmem:[#allocation2 + $0x68] sm:$0xff] %vm22_vm2, %v845_v5  ;;  %37 = vst.msk [vmem:[#allocation2 + $0x70] sm:$0xff] %vm22_vm2, %v845_v5  ;;  %719 = vmatprep.subr.bf16.mxu0 %v814_v4 }
   0x9   :  { %38 = vst.msk [vmem:[#allocation2 + $0x78] sm:$0xff] %vm22_vm2, %v845_v5 }
   0xb   :  { %720 = vmatpush3.bf16.msra.mxu0 %v814_v4 }
   0xc   :  { %10 = vsyncpa [#allocation4], 0  ;;  %772 = vmatprep.subr.mxu0 %v845_v5  ;;  %v818_v8 = vld [vmem:[%s1155_s0 + $0x18] sm:$0xff]   ;;  %v819_v9 = vld [vmem:[%s1155_s0 + $0x20] sm:$0xff]   ;;  %vm846_vm3 = vmmov 0   ;;  %vm412_vm4 = vcmask 60416  }
   0xd   :  { %v820_v10 = vld [vmem:[%s1155_s0 + $0x28] sm:$0xff]   ;;  %v821_v11 = vld [vmem:[%s1155_s0 + $0x30] sm:$0xff]   ;;  %v822_v12 = vld [vmem:[%s1155_s0 + $0x38] sm:$0xff]   ;;  %769 = vmatprep.mubr.msk.f32.mxu1 %vm846_vm3, %v845_v5  ;;  %vm596_vm5 = vcmask 1040384   ;;  %vm598_vm6 = vcmask 58368  }
   0xe   :  { %722 = vmatmul.mubr.msk.bf16.vlgmr.msra.gmra.mxu0 %vm131_vm1, %v816_v6  ;;  %v41_v13 = vld [vmem:[#allocation2 + $0x10] sm:$0xff]  ;;  %v39_v15 = vld [vmem:[#allocation2] sm:$0xff]  ;;  %v42_v18 = vld [vmem:[#allocation2 + $0x18] sm:$0xff] }
   0xf   :  { %725 = vmatprep.mubr.msk.bf16.mxu0 %vm131_vm1, %v817_v7  ;;  %v40_v21 = vld [vmem:[#allocation2 + $0x8] sm:$0xff]  ;;  %v45_v24 = vld [vmem:[#allocation2 + $0x30] sm:$0xff]  ;;  %v43_v27 = vld [vmem:[#allocation2 + $0x20] sm:$0xff] }
  0x10   :  { %v957_v28 = vld [vmem:[%s1157_s2] ss:$0 sm:$0xff]  ;;  %v46_v31 = vld [vmem:[#allocation2 + $0x38] sm:$0xff]  ;;  %v44_v36 = vld [vmem:[#allocation2 + $0x28] sm:$0xff] }
  0x11   :  { %v49_v42 = vld [vmem:[#allocation2 + $0x50] sm:$0xff]  ;;  %v47_v48 = vld [vmem:[#allocation2 + $0x40] sm:$0xff]  ;;  %v50_v55 = vld [vmem:[#allocation2 + $0x58] sm:$0xff] }
  0x12   :  { %v48_v62 = vld [vmem:[#allocation2 + $0x48] sm:$0xff]  ;;  %v53_v6 = vld [vmem:[#allocation2 + $0x70] sm:$0xff] }
  0x16   :  { %726 = vmatmul.mubr.msk.bf16.gmra.mxu0 %vm131_vm1, %v818_v8 }
  0x17   :  { %729 = vmatprep.mubr.msk.bf16.mxu0 %vm131_vm1, %v819_v9 }
  0x1e   :  { %730 = vmatmul.mubr.msk.bf16.gmra.mxu0 %vm131_vm1, %v820_v10 }
  0x1f   :  { %733 = vmatprep.mubr.msk.bf16.mxu0 %vm131_vm1, %v821_v11 }
  0x26   :  { %734 = vmatmul.mubr.msk.bf16.gmra.mxu0 %vm131_vm1, %v822_v12 }
  0x27   :  { %804 = vmatprep.mubr.msk.f32.mxu0 %vm846_vm3, %v845_v5 }
  0xce   :  { %v723_v14 = vpop.f32.mrf.mxu0 }
  0xcf   :  { %v259_v16 = vadd.f32 %v723_v14, %v41_v13  ;;  %v51_v13 = vld [vmem:[#allocation2 + $0x60] sm:$0xff] }
  0xd0   :  { %v194_v17 = vpop.f32.mrf.mxu0 }
  0xd1   :  { %276 = vst.msk [vmem:[#allocation2 + $0x10] sm:$0xff] %vm22_vm2, %v259_v16  ;;  %v257_v19 = vadd.f32 %v194_v17, %v39_v15 }
  0xd2   :  { %v724_v20 = vpop.f32.mrf.mxu0 }
  0xd3   :  { %274 = vst.msk [vmem:[#allocation2] sm:$0xff] %vm22_vm2, %v257_v19  ;;  %v260_v22 = vadd.f32 %v724_v20, %v42_v18  ;;  %v54_v20 = vld [vmem:[#allocation2 + $0x78] sm:$0xff] }
  0xd4   :  { %v197_v23 = vpop.f32.mrf.mxu0 }
  0xd5   :  { %277 = vst.msk [vmem:[#allocation2 + $0x18] sm:$0xff] %vm22_vm2, %v260_v22  ;;  %v258_v25 = vadd.f32 %v197_v23, %v40_v21 }
  0xd6   :  { %v727_v26 = vpop.f32.mrf.mxu0 }
  0xd7   :  { %275 = vst.msk [vmem:[#allocation2 + $0x8] sm:$0xff] %vm22_vm2, %v258_v25  ;;  %v263_v29 = vadd.f32 %v727_v26, %v45_v24 }
  0xd8   :  { %v210_v30 = vpop.f32.mrf.mxu0  ;;  %v295_v32 = vld [vmem:[#allocation2 + $0x10] sm:$0xff] }
  0xd9   :  { %280 = vst.msk [vmem:[#allocation2 + $0x30] sm:$0xff] %vm22_vm2, %v263_v29  ;;  %v261_v33 = vadd.f32 %v210_v30, %v43_v27  ;;  %v318_v34 = vadd.f32 %v957_v28, %v295_v32  ;;  %v52_v27 = vld [vmem:[#allocation2 + $0x68] sm:$0xff] }
  0xda   :  { %v728_v35 = vpop.f32.mrf.mxu0  ;;  %v293_v37 = vld [vmem:[#allocation2] sm:$0xff] }
  0xdb   :  { %278 = vst.msk [vmem:[#allocation2 + $0x20] sm:$0xff] %vm22_vm2, %v261_v33  ;;  %v264_v38 = vadd.f32 %v728_v35, %v46_v31  ;;  %v963_v39 = vmax.f32 %v318_v34, 0.0  ;;  %v316_v40 = vadd.f32 %v957_v28, %v293_v37 }
  0xdc   :  { %v213_v41 = vpop.f32.mrf.mxu0  ;;  %v296_v43 = vld [vmem:[#allocation2 + $0x18] sm:$0xff] }
  0xdd   :  { %281 = vst.msk [vmem:[#allocation2 + $0x38] sm:$0xff] %vm22_vm2, %v264_v38  ;;  %v262_v44 = vadd.f32 %v213_v41, %v44_v36  ;;  %v319_v45 = vadd.f32 %v957_v28, %v296_v43  ;;  %v656_v46 = vpack.c.bf16 %v963_v39, %v963_v39  ;;  %v970_v50 = vmax.f32 %v316_v40, 0.0 }
  0xde   :  { %v731_v47 = vpop.f32.mrf.mxu0  ;;  %v294_v49 = vld [vmem:[#allocation2 + $0x8] sm:$0xff] }
  0xdf   :  { %279 = vst.msk [vmem:[#allocation2 + $0x28] sm:$0xff] %vm22_vm2, %v262_v44  ;;  %v267_v51 = vadd.f32 %v731_v47, %v49_v42  ;;  %v973_v52 = vmax.f32 %v319_v45, 0.0  ;;  %v317_v53 = vadd.f32 %v957_v28, %v294_v49  ;;  %v654_v57 = vpack.c.bf16 %v970_v50, %v970_v50 }
  0xe0   :  { %415 = vst.msk [vmem:[%s1158_s3 + $0x8] sm:$0xf] %vm412_vm4, %v656_v46  ;;  %v226_v54 = vpop.f32.mrf.mxu0  ;;  %v299_v56 = vld [vmem:[#allocation2 + $0x30] sm:$0xff] }
  0xe1   :  { %284 = vst.msk [vmem:[#allocation2 + $0x50] sm:$0xff] %vm22_vm2, %v267_v51  ;;  %v265_v58 = vadd.f32 %v226_v54, %v47_v48  ;;  %v322_v59 = vadd.f32 %v957_v28, %v299_v56  ;;  %v657_v60 = vpack.c.bf16 %v973_v52, %v973_v52  ;;  %v986_v0 = vmax.f32 %v317_v53, 0.0 }
  0xe2   :  { %v732_v61 = vpop.f32.mrf.mxu0  ;;  %v297_v63 = vld [vmem:[#allocation2 + $0x20] sm:$0xff]  ;;  %413 = vst.msk [vmem:[%s1158_s3] sm:$0xf] %vm412_vm4, %v654_v57 }
  0xe3   :  { %282 = vst.msk [vmem:[#allocation2 + $0x40] sm:$0xff] %vm22_vm2, %v265_v58  ;;  %v268_v1 = vadd.f32 %v732_v61, %v50_v55  ;;  %v993_v2 = vmax.f32 %v322_v59, 0.0  ;;  %v320_v3 = vadd.f32 %v957_v28, %v297_v63  ;;  %v655_v8 = vpack.c.bf16 %v986_v0, %v986_v0 }
  0xe4   :  { %416 = vst.msk [vmem:[%s1158_s3 + $0xc] sm:$0xf] %vm412_vm4, %v657_v60  ;;  %v229_v4 = vpop.f32.mrf.mxu0  ;;  %v300_v7 = vld [vmem:[#allocation2 + $0x38] sm:$0xff] }
  0xe5   :  { %285 = vst.msk [vmem:[#allocation2 + $0x58] sm:$0xff] %vm22_vm2, %v268_v1  ;;  %v266_v9 = vadd.f32 %v229_v4, %v48_v62  ;;  %v323_v10 = vadd.f32 %v957_v28, %v300_v7  ;;  %v660_v11 = vpack.c.bf16 %v993_v2, %v993_v2  ;;  %v1006_v15 = vmax.f32 %v320_v3, 0.0 }
  0xe6   :  { %v735_v12 = vpop.f32.mrf.mxu0  ;;  %v298_v14 = vld [vmem:[#allocation2 + $0x28] sm:$0xff]  ;;  %414 = vst.msk [vmem:[%s1158_s3 + $0x4] sm:$0xf] %vm412_vm4, %v655_v8 }
  0xe7   :  { %283 = vst.msk [vmem:[#allocation2 + $0x48] sm:$0xff] %vm22_vm2, %v266_v9  ;;  %v271_v16 = vadd.f32 %v735_v12, %v53_v6  ;;  %v1013_v17 = vmax.f32 %v323_v10, 0.0  ;;  %v321_v18 = vadd.f32 %v957_v28, %v298_v14  ;;  %v658_v22 = vpack.c.bf16 %v1006_v15, %v1006_v15 }
  0xe8   :  { %419 = vst.msk [vmem:[%s1158_s3 + $0x18] sm:$0xf] %vm412_vm4, %v660_v11  ;;  %v242_v19 = vpop.f32.mrf.mxu0  ;;  %v303_v21 = vld [vmem:[#allocation2 + $0x50] sm:$0xff]  ;;  %v513_v14 = vmul.f32 %v993_v2, %v993_v2 }
  0xe9   :  { %288 = vst.msk [vmem:[#allocation2 + $0x70] sm:$0xff] %vm22_vm2, %v271_v16  ;;  %v269_v23 = vadd.f32 %v242_v19, %v51_v13  ;;  %v326_v24 = vadd.f32 %v957_v28, %v303_v21  ;;  %v661_v25 = vpack.c.bf16 %v1013_v17, %v1013_v17  ;;  %v1026_v30 = vmax.f32 %v321_v18, 0.0 }
  0xea   :  { %v736_v26 = vpop.f32.mrf.mxu0  ;;  %v301_v29 = vld [vmem:[#allocation2 + $0x40] sm:$0xff]  ;;  %417 = vst.msk [vmem:[%s1158_s3 + $0x10] sm:$0xf] %vm412_vm4, %v658_v22  ;;  %v514_v13 = vmul.f32 %v1013_v17, %v1013_v17  ;;  %v847_v18 = vmov 1.0  }
  0xeb   :  { %286 = vst.msk [vmem:[#allocation2 + $0x60] sm:$0xff] %vm22_vm2, %v269_v23  ;;  %v272_v31 = vadd.f32 %v736_v26, %v54_v20  ;;  %v1033_v32 = vmax.f32 %v326_v24, 0.0  ;;  %v324_v33 = vadd.f32 %v957_v28, %v301_v29  ;;  %v659_v36 = vpack.c.bf16 %v1026_v30, %v1026_v30 }
  0xec   :  { %420 = vst.msk [vmem:[%s1158_s3 + $0x1c] sm:$0xf] %vm412_vm4, %v661_v25  ;;  %v245_v34 = vpop.f32.mrf.mxu0  ;;  %v304_v35 = vld [vmem:[#allocation2 + $0x58] sm:$0xff]  ;;  %v512_v16 = vmul.f32 %v1026_v30, %v1026_v30 }
  0xed   :  { %289 = vst.msk [vmem:[#allocation2 + $0x78] sm:$0xff] %vm22_vm2, %v272_v31  ;;  %v270_v37 = vadd.f32 %v245_v34, %v52_v27  ;;  %v327_v38 = vadd.f32 %v957_v28, %v304_v35  ;;  %v664_v40 = vpack.c.bf16 %v1033_v32, %v1033_v32  ;;  %v1046_v42 = vmax.f32 %v324_v33, 0.0 }
  0xee   :  { %v302_v41 = vld [vmem:[#allocation2 + $0x48] sm:$0xff]  ;;  %418 = vst.msk [vmem:[%s1158_s3 + $0x14] sm:$0xf] %vm412_vm4, %v659_v36  ;;  %v517_v10 = vmul.f32 %v1033_v32, %v1033_v32 }
  0xef   :  { %287 = vst.msk [vmem:[#allocation2 + $0x68] sm:$0xff] %vm22_vm2, %v270_v37  ;;  %v343_v43 = vmax.f32 %v327_v38, 0.0  ;;  %v325_v44 = vadd.f32 %v957_v28, %v302_v41  ;;  %v662_v46 = vpack.c.bf16 %v1046_v42, %v1046_v42  ;;  %v515_v12 = vmul.f32 %v1046_v42, %v1046_v42 }
  0xf0   :  { %423 = vst.msk [vmem:[%s1158_s3 + $0x28] sm:$0xf] %vm412_vm4, %v664_v40  ;;  %v307_v45 = vld [vmem:[#allocation2 + $0x70] sm:$0xff] }
  0xf1   :  { %v330_v47 = vadd.f32 %v957_v28, %v307_v45  ;;  %v665_v48 = vpack.c.bf16 %v343_v43, %v343_v43  ;;  %v341_v49 = vmax.f32 %v325_v44, 0.0  ;;  %421 = vst.msk [vmem:[%s1158_s3 + $0x20] sm:$0xf] %vm412_vm4, %v662_v46  ;;  %v518_v9 = vmul.f32 %v343_v43, %v343_v43 }
  0xf2   :  { %v305_v51 = vld [vmem:[#allocation2 + $0x60] sm:$0xff] }
  0xf3   :  { %v346_v53 = vmax.f32 %v330_v47, 0.0  ;;  %v328_v54 = vadd.f32 %v957_v28, %v305_v51  ;;  %424 = vst.msk [vmem:[%s1158_s3 + $0x2c] sm:$0xf] %vm412_vm4, %v665_v48  ;;  %v663_v55 = vpack.c.bf16 %v341_v49, %v341_v49  ;;  %v516_v11 = vmul.f32 %v341_v49, %v341_v49 }
  0xf4   :  { %v308_v56 = vld [vmem:[#allocation2 + $0x78] sm:$0xff] }
  0xf5   :  { %v331_v57 = vadd.f32 %v957_v28, %v308_v56  ;;  %v668_v58 = vpack.c.bf16 %v346_v53, %v346_v53  ;;  %v344_v59 = vmax.f32 %v328_v54, 0.0  ;;  %422 = vst.msk [vmem:[%s1158_s3 + $0x24] sm:$0xf] %vm412_vm4, %v663_v55  ;;  %v521_v6 = vmul.f32 %v346_v53, %v346_v53 }
  0xf6   :  { %v306_v60 = vld [vmem:[#allocation2 + $0x68] sm:$0xff] }
  0xf7   :  { %v347_v61 = vmax.f32 %v331_v57, 0.0  ;;  %427 = vst.msk [vmem:[%s1158_s3 + $0x38] sm:$0xf] %vm412_vm4, %v668_v58  ;;  %v329_v62 = vadd.f32 %v957_v28, %v306_v60  ;;  %v666_v63 = vpack.c.bf16 %v344_v59, %v344_v59  ;;  %v519_v8 = vmul.f32 %v344_v59, %v344_v59 }
  0xf9   :  { %v669_v1 = vpack.c.bf16 %v347_v61, %v347_v61  ;;  %738 = vmatpush3.msra.mxu1 %v347_v61  ;;  %v522_v3 = vmul.f32 %v347_v61, %v347_v61  ;;  %v345_v4 = vmax.f32 %v329_v62, 0.0  ;;  %425 = vst.msk [vmem:[%s1158_s3 + $0x30] sm:$0xf] %vm412_vm4, %v666_v63 }
  0xfa   :  { %739 = vmatprep.subr.mxu1 %v845_v5 }
  0xfb   :  { %428 = vst.msk [vmem:[%s1158_s3 + $0x3c] sm:$0xf] %vm412_vm4, %v669_v1  ;;  %740 = vmatpush3.msra.mxu1 %v346_v53  ;;  %773 = vmatpush3.msra.mxu0 %v522_v3  ;;  %v667_v28 = vpack.c.bf16 %v345_v4, %v345_v4  ;;  %v520_v7 = vmul.f32 %v345_v4, %v345_v4 }
  0xfc   :  { %741 = vmatprep.subr.mxu1 %v845_v5  ;;  %774 = vmatprep.subr.mxu0 %v845_v5 }
  0xfd   :  { %426 = vst.msk [vmem:[%s1158_s3 + $0x34] sm:$0xf] %vm412_vm4, %v667_v28  ;;  %742 = vmatpush3.msra.mxu1 %v345_v4  ;;  %775 = vmatpush3.msra.mxu0 %v521_v6  ;;  %s848_s3 = smov [#allocation3]  }
  0xfe   :  { %743 = vmatprep.subr.mxu1 %v845_v5  ;;  %776 = vmatprep.subr.mxu0 %v845_v5  ;;  %s608_s13 = sshll.u32 %s848_s3, 4  ;;  %s609_s13 = int_to_ptr.vmem [resolvable:$true] %s608_s13 }
  0xff   :  { %744 = vmatpush3.msra.mxu1 %v344_v59  ;;  %777 = vmatpush3.msra.mxu0 %v520_v7  ;;  %s823_s14 = scalar_lea.vmem %s609_s13, 32  ;;  %p828_p1 = scmp.lt.s32.totalorder %s609_s13, %s609_s13 }
 0x100   :  { %745 = vmatprep.subr.mxu1 %v845_v5  ;;  %778 = vmatprep.subr.mxu0 %v845_v5  ;;  %p824_p0 = scmp.ne.s32.totalorder %s609_s13, %s823_s14  ;;  %p829_p2 = scmp.lt.s32.totalorder %s823_s14, %s823_s14 }
 0x101   :  { %746 = vmatpush3.msra.mxu1 %v343_v43  ;;  %779 = vmatpush3.msra.mxu0 %v519_v8 }
 0x102   :  { %747 = vmatprep.subr.mxu1 %v845_v5  ;;  %780 = vmatprep.subr.mxu0 %v845_v5  ;;  %p830_p3 = por %p829_p2, %p828_p1 }
 0x103   :  { %748 = vmatpush3.msra.mxu1 %v1033_v32  ;;  %781 = vmatpush3.msra.mxu0 %v518_v9 }
 0x104   :  { %749 = vmatprep.subr.mxu1 %v845_v5  ;;  %782 = vmatprep.subr.mxu0 %v845_v5  ;;  %p831_p4 = pnand %p830_p3, %p824_p0 }
 0x105   :  { %750 = vmatpush3.msra.mxu1 %v341_v49  ;;  %783 = vmatpush3.msra.mxu0 %v517_v10 }
 0x106   :  { %751 = vmatprep.subr.mxu1 %v845_v5  ;;  %784 = vmatprep.subr.mxu0 %v845_v5 }
 0x107   :  { %752 = vmatpush3.msra.mxu1 %v1046_v42  ;;  %785 = vmatpush3.msra.mxu0 %v516_v11 }
 0x108   :  { %753 = vmatprep.subr.mxu1 %v845_v5  ;;  %786 = vmatprep.subr.mxu0 %v845_v5 }
 0x109   :  { %754 = vmatpush3.msra.mxu1 %v1013_v17  ;;  %787 = vmatpush3.msra.mxu0 %v515_v12  ;;  %v510_v17 = vmul.f32 %v973_v52, %v973_v52 }
 0x10a   :  { %755 = vmatprep.subr.mxu1 %v845_v5  ;;  %788 = vmatprep.subr.mxu0 %v845_v5 }
 0x10b   :  { %756 = vmatpush3.msra.mxu1 %v993_v2  ;;  %789 = vmatpush3.msra.mxu0 %v514_v13  ;;  %v511_v2 = vmul.f32 %v1006_v15, %v1006_v15 }
 0x10c   :  { %757 = vmatprep.subr.mxu1 %v845_v5  ;;  %790 = vmatprep.subr.mxu0 %v845_v5 }
 0x10d   :  { %758 = vmatpush3.msra.mxu1 %v1026_v30  ;;  %791 = vmatpush3.msra.mxu0 %v513_v14 }
 0x10e   :  { %759 = vmatprep.subr.mxu1 %v845_v5  ;;  %792 = vmatprep.subr.mxu0 %v845_v5 }
 0x10f   :  { %760 = vmatpush3.msra.mxu1 %v1006_v15  ;;  %793 = vmatpush3.msra.mxu0 %v512_v16  ;;  %v509_v15 = vmul.f32 %v963_v39, %v963_v39 }
 0x110   :  { %761 = vmatprep.subr.mxu1 %v845_v5  ;;  %794 = vmatprep.subr.mxu0 %v845_v5 }
 0x111   :  { %762 = vmatpush3.msra.mxu1 %v973_v52  ;;  %795 = vmatpush3.msra.mxu0 %v511_v2  ;;  %v508_v52 = vmul.f32 %v986_v0, %v986_v0 }
 0x112   :  { %763 = vmatprep.subr.mxu1 %v845_v5  ;;  %796 = vmatprep.subr.mxu0 %v845_v5 }
 0x113   :  { %764 = vmatpush3.msra.mxu1 %v963_v39  ;;  %797 = vmatpush3.msra.mxu0 %v510_v17  ;;  %v507_v39 = vmul.f32 %v970_v50, %v970_v50 }
 0x114   :  { %765 = vmatprep.subr.mxu1 %v845_v5  ;;  %798 = vmatprep.subr.mxu0 %v845_v5 }
 0x115   :  { %766 = vmatpush3.msra.mxu1 %v986_v0  ;;  %799 = vmatpush3.msra.mxu0 %v509_v15 }
 0x116   :  { %767 = vmatprep.subr.mxu1 %v845_v5  ;;  %800 = vmatprep.subr.mxu0 %v845_v5 }
 0x117   :  { %768 = vmatpush3.msra.mxu1 %v970_v50  ;;  %801 = vmatpush3.msra.mxu0 %v508_v52 }
 0x118   :  { %802 = vmatprep.subr.mxu0 %v845_v5  ;;  %770 = vmatmul.mubr.f32.vlgmr.msra.gmra.mxu1 %v847_v18 }
 0x119   :  { %803 = vmatpush3.msra.mxu0 %v507_v39 }
 0x11a   :  { %805 = vmatmul.mubr.f32.vlgmr.msra.gmra.mxu0 %v847_v18 }
 0x1d8   :  { %v503_v19 = vpop.f32.mrf.mxu1 }
 0x1da   :  { %v589_v0 = vpop.f32.mrf.mxu0  ;;  %v771_v20 = vpop.f32.mrf.mxu1 }
 0x1db   :  { %v594_v21 = vrot.slane %v589_v0, 7 }
 0x1dc   :  { %v806_v22 = vpop.f32.mrf.mxu0 }
 0x1dd   :  { %v597_v23 = vsel %vm596_vm5, %v503_v19, %v594_v21 }
 0x1de   :  { %599 = vst.msk [vmem:[#allocation3] sm:$0x3] %vm598_vm6, %v597_v23 }
 0x1df   :  { %834 = shalt.err (!%p831_p4)
}
 0x1e0   :  { %611 = dma.vmem_to_hbm [thread:$0]  %s609_s13, 32, %s1159_s4, [#allocation4]  }
 0x1e1   :  { %843 = dma.done.wait [#allocation4], 32  }
 0x1e2   :  { %844 = vsyncadd [#allocation4], 4294967264 }
 0x1e3   :  { %617 = vsyncpa [#allocation4], 1 }

</bundles_post_ra>
